<compile_context>
chip_gen: v6e
topology: v6e:2x2x1
jax: 0.10.0
libtpu: 0.0.40
codegen_flags: <defaults>
</compile_context>

<pallas_src>
import functools

import jax
import jax.numpy as jnp
from jax import lax
from jax.experimental import pallas as pl
from jax.experimental.pallas import tpu as pltpu


_LANE = 128
_PAD_DIST = 1e30          # squared-norm assigned to padded points (never wins a min)


# --------------------------------------------------------------------------- #
# Kernel
# --------------------------------------------------------------------------- #
def _chamfer_kernel(x_ref, y_ref, min1_ref, min2_ref, *, nt):
    # x_ref:    (1, D+2, Nt)    augmented gts tile   [x, ||x||^2, 1]
    # y_ref:    (1, D+2, Mt)    augmented preds tile [-2y, 1, ||y||^2]
    # min1_ref: (1, 1, Mt)      running min over gts index (per pred column);
    #                           accumulated across the innermost n-tile axis.
    # min2_ref: (1, 1, N_pad)   running min over pred index (per gts row);
    #                           full row resident, current Nt slice updated,
    #                           accumulated across the m-tile axis.
    jm = pl.program_id(1)     # m-tile index (middle grid axis)
    i_n = pl.program_id(2)    # n-tile index (innermost grid axis)

    # Whole distance tile in a single MXU pass (operand augmentation, K = D+2):
    #   P[i, j] = sum_d x_d * (-2 y_d) + ||x_i||^2 * 1 + 1 * ||y_j||^2
    p = lax.dot_general(x_ref[0], y_ref[0], (((0,), (0,)), ((), ())),
                        preferred_element_type=jnp.float32)          # (Nt, Mt)

    # --- min over gts rows -> one value per pred column (lane-major). ------- #
    cmin = jnp.min(p, axis=0)                                        # (Mt,)

    @pl.when(i_n == 0)
    def _():
        min1_ref[0, 0, :] = cmin

    @pl.when(i_n != 0)
    def _():
        min1_ref[0, 0, :] = jnp.minimum(min1_ref[0, 0, :], cmin)

    # --- min over pred columns -> one value per gts row. -------------------- #
    rmin = jnp.min(p, axis=1)                                        # (Nt,)
    start = pl.multiple_of(i_n * nt, nt)                             # lane-aligned

    @pl.when(jm == 0)
    def _():
        min2_ref[0, 0, pl.ds(start, nt)] = rmin

    @pl.when(jm != 0)
    def _():
        min2_ref[0, 0, pl.ds(start, nt)] = jnp.minimum(
            min2_ref[0, 0, pl.ds(start, nt)], rmin)


# --------------------------------------------------------------------------- #
# Wrapper helpers
# --------------------------------------------------------------------------- #
def _round_up(x, m):
    return (x + m - 1) // m * m


def _vmem_capacity_bytes():
    """Physical VMEM per TensorCore; conservative v7x fallback if unknown."""
    try:
        cap = getattr(pltpu.get_tpu_info(), "vmem_capacity_bytes", None)
        if cap:
            return int(cap)
    except Exception:
        pass
    return 64 * 1024 * 1024


def _tile_candidates(dim_pad):
    """Multiples of 128 that evenly divide the padded dimension."""
    k = dim_pad // _LANE
    return sorted(_LANE * d for d in range(1, k + 1) if k % d == 0)


def _pick_tiles(n_pad, m_pad, p_tile_budget_bytes):
    """Largest (Nt, Mt) such that the f32 (Nt, Mt) distance tile fits budget."""
    best, best_elems = (_LANE, _LANE), _LANE * _LANE
    for nt in _tile_candidates(n_pad):
        for mt in _tile_candidates(m_pad):
            elems = nt * mt
            if elems * 4 <= p_tile_budget_bytes and elems > best_elems:
                best, best_elems = (nt, mt), elems
    return best


def _augment(pts, pad_to, *, is_gts):
    """(B, P, D) -> (B, D+2, pad_to) f32, lane-dense, padded with inert points.

    Padded points have zero coordinates and a squared-norm row of _PAD_DIST, so
    any distance involving a padded point is >= _PAD_DIST and never wins a min
    against real points (assumes real squared distances << 1e30).
    """
    ptsf = pts.astype(jnp.float32)
    b, p, d = ptsf.shape
    if pad_to > p:
        ptsf = jnp.concatenate(
            [ptsf, jnp.zeros((b, pad_to - p, d), jnp.float32)], axis=1)
    sq = jnp.sum(ptsf * ptsf, axis=-1, keepdims=True)                # (B, pad, 1)
    if pad_to > p:
        idx = jnp.arange(pad_to)[None, :, None]
        sq = jnp.where(idx >= p, jnp.float32(_PAD_DIST), sq)
    ones = jnp.ones_like(sq)
    if is_gts:
        aug = jnp.concatenate([ptsf, sq, ones], axis=-1)             # [x, |x|^2, 1]
    else:
        aug = jnp.concatenate([-2.0 * ptsf, ones, sq], axis=-1)      # [-2y, 1, |y|^2]
    return jnp.swapaxes(aug, 1, 2)                                   # (B, D+2, pad)


# --------------------------------------------------------------------------- #
# Public entry point
# --------------------------------------------------------------------------- #
@jax.jit
def chamfer_loss(preds, gts):
    """Chamfer loss. preds: (B, M, D), gts: (B, N, D). Returns scalar f32."""
    B, M, D = preds.shape
    Bg, N, Dg = gts.shape
    assert B == Bg and D == Dg

    n_pad = _round_up(N, _LANE)
    m_pad = _round_up(M, _LANE)
    daug = D + 2

    # Augmented, lane-dense operands built once by XLA (O(B*N*D) work, tiny
    # compared to the O(B*N*M) kernel).
    x_aug = _augment(gts, n_pad, is_gts=True)        # (B, D+2, N_pad)
    y_aug = _augment(preds, m_pad, is_gts=False)     # (B, D+2, M_pad)

    # Generation-aware VMEM budgeting.
    vmem_cap = _vmem_capacity_bytes()
    vmem_limit = int(vmem_cap * 3 // 4)              # ~48 MiB v7x, ~96 MiB v5e/v6e
    nt, mt = _pick_tiles(n_pad, m_pad, vmem_cap // 6)
    n_tiles = n_pad // nt
    m_tiles = m_pad // mt

    kernel = functools.partial(_chamfer_kernel, nt=nt)

    min_over_gts, min_over_preds = pl.pallas_call(
        kernel,
        out_shape=(
            jax.ShapeDtypeStruct((B, 1, m_pad), jnp.float32),   # min over gts idx
            jax.ShapeDtypeStruct((B, 1, n_pad), jnp.float32),   # min over pred idx
        ),
        grid_spec=pltpu.PrefetchScalarGridSpec(
            num_scalar_prefetch=0,
            grid=(B, m_tiles, n_tiles),
            in_specs=[
                pl.BlockSpec((1, daug, nt), lambda b, jm, i: (b, 0, i)),   # x_aug
                pl.BlockSpec((1, daug, mt), lambda b, jm, i: (b, 0, jm)),  # y_aug
            ],
            out_specs=(
                # Accumulator across the innermost n axis (block fixed per jm).
                pl.BlockSpec((1, 1, mt), lambda b, jm, i: (b, 0, jm)),
                # Full per-batch row, resident across both reduction axes.
                pl.BlockSpec((1, 1, n_pad), lambda b, jm, i: (b, 0, 0)),
            ),
        ),
        compiler_params=pltpu.CompilerParams(
            # Batch steps write disjoint outputs -> shard across TCs on v7x;
            # both tile axes carry running-min accumulators -> "arbitrary".
            dimension_semantics=("parallel", "arbitrary", "arbitrary"),
            vmem_limit_bytes=vmem_limit,
        ),
    )(x_aug, y_aug)

    # Global means in XLA (matches the reference's single global mean); padded
    # columns are sliced off so the denominators are the real M / N.
    loss_1 = jnp.mean(min_over_gts.reshape(B, m_pad)[:, :M])
    loss_2 = jnp.mean(min_over_preds.reshape(B, n_pad)[:, :N])
    return loss_1 + loss_2


# --------------------------------------------------------------------------- #
# Pure-JAX reference (mirrors the PyTorch module exactly)
# --------------------------------------------------------------------------- #
def _chamfer_loss_ref(preds, gts):
    x, y = gts, preds
    xx = jnp.sum(x * x, axis=-1)                       # (B, N)
    yy = jnp.sum(y * y, axis=-1)                       # (B, M)
    zz = jnp.einsum("bnd,bmd->bnm", x, y)              # (B, N, M)
    P = xx[:, :, None] + yy[:, None, :] - 2.0 * zz
    loss_1 = jnp.mean(jnp.min(P, axis=1))
    loss_2 = jnp.mean(jnp.min(P, axis=2))
    return loss_1 + loss_2


if __name__ == "__main__":
    key = jax.random.PRNGKey(0)
    k1, k2 = jax.random.split(key)
    B, M, N, D = 4, 48, 64, 3
    preds = jax.random.normal(k1, (B, M, D), dtype=jnp.float32)
    gts = jax.random.normal(k2, (B, N, D), dtype=jnp.float32)

    out = jax.block_until_ready(chamfer_loss(preds, gts))
    ref = jax.block_until_ready(_chamfer_loss_ref(preds, gts))
    assert jnp.allclose(out, ref, rtol=1e-4, atol=1e-4), (out, ref)
    print("KERNEL_OK")
</pallas_src>

<mosaic_0001>
module attributes {stable_mosaic.version = 11 : i64} {
  func.func @_chamfer_kernel(%arg0: i32, %arg1: i32, %arg2: i32, %arg3: memref<1x5x128xf32, #tpu.memory_space<vmem>>, %arg4: memref<1x5x128xf32, #tpu.memory_space<vmem>>, %arg5: memref<1x1x128xf32, #tpu.memory_space<vmem>>, %arg6: memref<1x1x128xf32, #tpu.memory_space<vmem>>) attributes {dimension_semantics = [#tpu.dimension_semantics<parallel>, #tpu.dimension_semantics<arbitrary>, #tpu.dimension_semantics<arbitrary>], iteration_bounds = array<i64: 4, 1, 1>, scalar_prefetch = 0 : i64, scratch_operands = 0 : i64, tpu.core_type = #tpu.core_type<tc>, window_params = [{transform_indices = @transform_0, window_bounds = array<i64: 1, 5, 128>}, {transform_indices = @transform_1, window_bounds = array<i64: 1, 5, 128>}, {transform_indices = @transform_2, window_bounds = array<i64: 1, 1, 128>}, {transform_indices = @transform_3, window_bounds = array<i64: 1, 1, 128>}]} {
    %c0 = arith.constant 0 : index
    %c0_0 = arith.constant 0 : index
    %c0_1 = arith.constant 0 : index
    %0 = vector.load %arg3[%c0, %c0_0, %c0_1] : memref<1x5x128xf32, #tpu.memory_space<vmem>>, vector<1x5x128xf32>
    %1 = vector.shape_cast %0 : vector<1x5x128xf32> to vector<5x128xf32>
    %c0_2 = arith.constant 0 : index
    %c0_3 = arith.constant 0 : index
    %c0_4 = arith.constant 0 : index
    %2 = vector.load %arg4[%c0_2, %c0_3, %c0_4] : memref<1x5x128xf32, #tpu.memory_space<vmem>>, vector<1x5x128xf32>
    %3 = vector.shape_cast %2 : vector<1x5x128xf32> to vector<5x128xf32>
    %cst = arith.constant dense<0.000000e+00> : vector<128x128xf32>
    %4 = tpu.matmul %1, %3, %cst {dimension_numbers = #tpu.dot_dimension_numbers<[0], [0], [1], [1], [0, 1, 1, 1], [], []>} : vector<5x128xf32>, vector<5x128xf32>, vector<128x128xf32> -> vector<128x128xf32>
    %cst_5 = arith.constant dense<0x7F800000> : vector<128xf32>
    %5 = vector.multi_reduction <minimumf>, %4, %cst_5 [0] : vector<128x128xf32> to vector<128xf32>
    %c0_i32 = arith.constant 0 : i32
    %6 = arith.cmpi eq, %arg2, %c0_i32 : i32
    %7 = arith.extui %6 : i1 to i32
    %c0_i32_6 = arith.constant 0 : i32
    %8 = arith.cmpi ne, %7, %c0_i32_6 : i32
    scf.if %8 {
      %c0_14 = arith.constant 0 : index
      %c0_15 = arith.constant 0 : index
      %c0_16 = arith.constant 0 : index
      %21 = vector.load %arg5[%c0_14, %c0_15, %c0_16] : memref<1x1x128xf32, #tpu.memory_space<vmem>>, vector<1x1x128xf32>
      %22 = vector.shape_cast %21 : vector<1x1x128xf32> to vector<128xf32>
      %23 = vector.shape_cast %5 : vector<128xf32> to vector<1x1x128xf32>
      tpu.vector_store %arg5[%c0_14, %c0_15, %c0_16], %23 {strides = array<i32>} : memref<1x1x128xf32, #tpu.memory_space<vmem>>, vector<1x1x128xf32>,
    } else {
    }
    %c0_i32_7 = arith.constant 0 : i32
    %9 = arith.cmpi ne, %arg2, %c0_i32_7 : i32
    %10 = arith.extui %9 : i1 to i32
    %c0_i32_8 = arith.constant 0 : i32
    %11 = arith.cmpi ne, %10, %c0_i32_8 : i32
    scf.if %11 {
      %c0_14 = arith.constant 0 : index
      %c0_15 = arith.constant 0 : index
      %c0_16 = arith.constant 0 : index
      %21 = vector.load %arg5[%c0_14, %c0_15, %c0_16] : memref<1x1x128xf32, #tpu.memory_space<vmem>>, vector<1x1x128xf32>
      %22 = vector.shape_cast %21 : vector<1x1x128xf32> to vector<128xf32>
      %23 = arith.minimumf %22, %5 : vector<128xf32>
      %c0_17 = arith.constant 0 : index
      %c0_18 = arith.constant 0 : index
      %c0_19 = arith.constant 0 : index
      %24 = vector.load %arg5[%c0_17, %c0_18, %c0_19] : memref<1x1x128xf32, #tpu.memory_space<vmem>>, vector<1x1x128xf32>
      %25 = vector.shape_cast %24 : vector<1x1x128xf32> to vector<128xf32>
      %26 = vector.shape_cast %23 : vector<128xf32> to vector<1x1x128xf32>
      tpu.vector_store %arg5[%c0_17, %c0_18, %c0_19], %26 {strides = array<i32>} : memref<1x1x128xf32, #tpu.memory_space<vmem>>, vector<1x1x128xf32>,
    } else {
    }
    %cst_9 = arith.constant dense<0x7F800000> : vector<128xf32>
    %12 = vector.multi_reduction <minimumf>, %4, %cst_9 [1] : vector<128x128xf32> to vector<128xf32>
    %c128_i32 = arith.constant 128 : i32
    %13 = arith.muli %arg2, %c128_i32 : i32
    %14 = tpu.assume_multiple %13, 128 : i32
    %c0_i32_10 = arith.constant 0 : i32
    %15 = arith.cmpi eq, %arg1, %c0_i32_10 : i32
    %16 = arith.extui %15 : i1 to i32
    %c0_i32_11 = arith.constant 0 : i32
    %17 = arith.cmpi ne, %16, %c0_i32_11 : i32
    scf.if %17 {
      %c0_14 = arith.constant 0 : index
      %c0_15 = arith.constant 0 : index
      %21 = arith.index_cast %14 : i32 to index
      %22 = vector.load %arg6[%c0_14, %c0_15, %21] : memref<1x1x128xf32, #tpu.memory_space<vmem>>, vector<1x1x128xf32>
      %23 = vector.shape_cast %22 : vector<1x1x128xf32> to vector<128xf32>
      %24 = vector.shape_cast %12 : vector<128xf32> to vector<1x1x128xf32>
      tpu.vector_store %arg6[%c0_14, %c0_15, %21], %24 {strides = array<i32>} : memref<1x1x128xf32, #tpu.memory_space<vmem>>, vector<1x1x128xf32>,
    } else {
    }
    %c0_i32_12 = arith.constant 0 : i32
    %18 = arith.cmpi ne, %arg1, %c0_i32_12 : i32
    %19 = arith.extui %18 : i1 to i32
    %c0_i32_13 = arith.constant 0 : i32
    %20 = arith.cmpi ne, %19, %c0_i32_13 : i32
    scf.if %20 {
      %c0_14 = arith.constant 0 : index
      %c0_15 = arith.constant 0 : index
      %21 = arith.index_cast %14 : i32 to index
      %22 = vector.load %arg6[%c0_14, %c0_15, %21] : memref<1x1x128xf32, #tpu.memory_space<vmem>>, vector<1x1x128xf32>
      %23 = vector.shape_cast %22 : vector<1x1x128xf32> to vector<128xf32>
      %24 = arith.minimumf %23, %12 : vector<128xf32>
      %c0_16 = arith.constant 0 : index
      %c0_17 = arith.constant 0 : index
      %25 = arith.index_cast %14 : i32 to index
      %26 = vector.load %arg6[%c0_16, %c0_17, %25] : memref<1x1x128xf32, #tpu.memory_space<vmem>>, vector<1x1x128xf32>
      %27 = vector.shape_cast %26 : vector<1x1x128xf32> to vector<128xf32>
      %28 = vector.shape_cast %24 : vector<128xf32> to vector<1x1x128xf32>
      tpu.vector_store %arg6[%c0_16, %c0_17, %25], %28 {strides = array<i32>} : memref<1x1x128xf32, #tpu.memory_space<vmem>>, vector<1x1x128xf32>,
    } else {
    }
    return
  }
  func.func @transform_0(%arg0: i32, %arg1: i32, %arg2: i32) -> (i32, i32, i32) {
    %c0_i32 = arith.constant 0 : i32
    %c0_i32_0 = arith.constant 0 : i32
    return %arg0, %c0_i32, %arg2 : i32, i32, i32
  }
  func.func @transform_1(%arg0: i32, %arg1: i32, %arg2: i32) -> (i32, i32, i32) {
    %c0_i32 = arith.constant 0 : i32
    %c0_i32_0 = arith.constant 0 : i32
    return %arg0, %c0_i32, %arg1 : i32, i32, i32
  }
  func.func @transform_2(%arg0: i32, %arg1: i32, %arg2: i32) -> (i32, i32, i32) {
    %c0_i32 = arith.constant 0 : i32
    %c0_i32_0 = arith.constant 0 : i32
    return %arg0, %c0_i32, %arg1 : i32, i32, i32
  }
  func.func @transform_3(%arg0: i32, %arg1: i32, %arg2: i32) -> (i32, i32, i32) {
    %c0_i32 = arith.constant 0 : i32
    %c0_i32_0 = arith.constant 0 : i32
    %c0_i32_1 = arith.constant 0 : i32
    return %arg0, %c0_i32, %c0_i32_0 : i32, i32, i32
  }
}

</mosaic_0001>

<bundles_post_ra>
// kernel: chamfer_loss.1
= control target key start
LH: loop header
LB: loop body
LE: loop exit
PB: predicated region body
PF: predicated region fallthrough
CT: control target
= control target key end

     0   :  { %s2422_s12 = smov 0   ;;  %s2424_s13 = smov 0   ;;  %s2518_s0 = inlined_call_operand.vmem [shape: f32[4,5,128], index: 0, kind: input, shape index: {}]   ;;  %s2519_s1 = inlined_call_operand.vmem [shape: f32[4,5,128], index: 1, kind: input, shape index: {}]   ;;  %s2520_s2 = inlined_call_operand.vmem [shape: f32[4,1,128], index: 2, kind: output, shape index: {0}]   ;;  %s2521_s3 = inlined_call_operand.vmem [shape: f32[4,1,128], index: 3, kind: output, shape index: {1}]  }
   0x1   :  { %s2426_s14 = smov 0  }
   0x2 LB: > { %s33_s15 = sadd.s32 1, %s2396_s13  ;;  %p2286_p0 = scmp.ge.s32.totalorder %s2400_s14, 1  ;;  %s2400_s14 = sphi %s2426_s14, %s14_s14   ;;  %s2396_s13 = sphi %s2424_s13, %s2523_s13   ;;  %s2392_s12 = sphi %s2422_s12, %s2522_s12  }
   0x3   : > { %p35_p1 = scmp.ge.s32.totalorder %s33_s15, 4  ;;  %p179_p2 = scmp.lt.s32.totalorder %s2400_s14, 5 }
   0x5   : > { %s2525_s15 = smov (%p35_p1, %s33_s15), 0  ;;  %p180_p3 = pnand %p2286_p0, %p179_p2 }
   0x6   : > { %p216_p4 = scmp.lt.s32.totalorder (!%p180_p3), %s2392_s12, 3 }
   0x7   : > { %183 = sbr.rel (%p180_p3) target bundleno = 542 (0x21e), region = 28 }
   0xc   : > { %s2527_s12 = smov (!%p216_p4, %s2392_s12), 3  ;;  %vm322_vm0 = vcmask 1044480   ;;  %vm273_vm1 = vcmask 39936   ;;  %v557_v60 = vlaneseq  ;;  %vm568_vm2 = vcmask 130112  }
   0xd   : > { %s2287_s16 = sshll.u32 %s2527_s12, 3  ;;  %s235_s25 = scalar_lea.vmem %s2520_s2, %s2527_s12  ;;  %vm575_vm3 = vcmask 195712   ;;  %vm582_vm4 = vcmask 261312   ;;  %vm589_vm5 = vcmask 326912   ;;  %vm596_vm6 = vcmask 392512  }
   0xe   : > { %s222_s19 = scalar_lea.vmem %s2518_s0, %s2287_s16  ;;  %s229_s22 = scalar_lea.vmem %s2519_s1, %s2287_s16  ;;  %v2469_v62 = vand.u32 127, %v557_v60  ;;  %vm603_vm7 = vcmask 458112   ;;  %vm610_vm8 = vcmask 523712   ;;  %vm617_vm9 = vcmask 589312  }
   0xf   : > { %v239_v0 = vld [vmem:[%s222_s19] sm:$0x1f]  ;;  %vm624_vm10 = vcmask 654912   ;;  %vm631_vm11 = vcmask 720512   ;;  %vm638_vm12 = vcmask 786112   ;;  %vm645_vm13 = vcmask 851712   ;;  %s238_s28 = scalar_lea.vmem %s2521_s3, %s2527_s12 }
  0x10   : > { %v240_v1 = vld [vmem:[%s229_s22] sm:$0x1f]  ;;  %241 = vxpose.xlu0.b32.start.end [1/1] (short) %v239_v0, 128  ;;  %v570_v63 = vadd.s32 4294967280, %v2469_v62  ;;  %vm652_vm14 = vcmask 917312   ;;  %vm659_vm15 = vcmask 982912  }
  0x11   : > { %2325 = vmatprep.subr.msk.mxu0 %vm322_vm0, %v240_v1  ;;  %2351 = vmatprep.subr.msk.mxu1 %vm322_vm0, %v240_v1 }
  0x12   : > { %2326 = vmatpush3.msk.msra.mxu0 %vm322_vm0, %v240_v1  ;;  %2352 = vmatpush3.msk.msra.mxu1 %vm322_vm0, %v240_v1  ;;  %v2472_v1 = vshrl.u32 %v557_v60, 7  ;;  %vm666_vm0 = vcmask 1048512  }
  0x8c   : > { %v257_v2 = vpop.trf.xlu0 }
  0x8d   : > { %2327 = vmatprep.mubr.msk.f32.mxu0 %vm273_vm1, %v257_v2  ;;  %v563_v2 = vadd.s32 4294967288, %v2469_v62 }
  0x90   : > { %v258_v3 = vpop.trf.xlu0 }
  0x91   : > { %2328 = vmatmul.mubr.msk.f32.vlgmr.msra.gmra.mxu0 %vm273_vm1, %v258_v3  ;;  %v561_v3 = vsub.s32 %v2469_v62, %v2472_v1 }
  0x94   : > { %v259_v4 = vpop.trf.xlu0 }
  0x95   : > { %2330 = vmatprep.mubr.msk.f32.mxu0 %vm273_vm1, %v259_v4 }
  0x98   : > { %v260_v5 = vpop.trf.xlu0 }
  0x99   : > { %2331 = vmatmul.mubr.msk.f32.gmra.mxu0 %vm273_vm1, %v260_v5  ;;  %v573_v5 = vsub.s32 %v570_v63, %v2472_v1 }
  0x9c   : > { %v261_v6 = vpop.trf.xlu0 }
  0x9d   : > { %2333 = vmatprep.mubr.msk.f32.mxu0 %vm273_vm1, %v261_v6  ;;  %v584_v6 = vadd.s32 4294967264, %v2469_v62 }
  0xa0   : > { %v262_v7 = vpop.trf.xlu0 }
  0xa1   : > { %2334 = vmatmul.mubr.msk.f32.gmra.mxu0 %vm273_vm1, %v262_v7 }
  0xa4   : > { %v263_v8 = vpop.trf.xlu0 }
  0xa5   : > { %2336 = vmatprep.mubr.msk.f32.mxu0 %vm273_vm1, %v263_v8  ;;  %v566_v8 = vsub.s32 %v563_v2, %v2472_v1 }
  0xa8   : > { %v264_v9 = vpop.trf.xlu0 }
  0xa9   : > { %2337 = vmatmul.mubr.msk.f32.gmra.mxu0 %vm273_vm1, %v264_v9  ;;  %v577_v9 = vadd.s32 4294967272, %v2469_v62 }
  0xac   : > { %v265_v10 = vpop.trf.xlu0 }
  0xad   : > { %2339 = vmatprep.mubr.msk.f32.mxu1 %vm273_vm1, %v265_v10 }
  0xb0   : > { %v266_v11 = vpop.trf.xlu0 }
  0xb1   : > { %2340 = vmatmul.mubr.msk.f32.vlgmr.msra.gmra.mxu1 %vm273_vm1, %v266_v11 }
  0xb4   : > { %v267_v12 = vpop.trf.xlu0 }
  0xb5   : > { %2342 = vmatprep.mubr.msk.f32.mxu1 %vm273_vm1, %v267_v12  ;;  %v587_v12 = vsub.s32 %v584_v6, %v2472_v1 }
  0xb8   : > { %v268_v13 = vpop.trf.xlu0 }
  0xb9   : > { %2343 = vmatmul.mubr.msk.f32.gmra.mxu1 %vm273_vm1, %v268_v13  ;;  %v598_v13 = vadd.s32 4294967248, %v2469_v62 }
  0xbc   : > { %v269_v14 = vpop.trf.xlu0 }
  0xbd   : > { %2345 = vmatprep.mubr.msk.f32.mxu1 %vm273_vm1, %v269_v14 }
  0xc0   : > { %v270_v15 = vpop.trf.xlu0 }
  0xc1   : > { %2346 = vmatmul.mubr.msk.f32.gmra.mxu1 %vm273_vm1, %v270_v15 }
  0xc4   : > { %v271_v16 = vpop.trf.xlu0 }
  0xc5   : > { %2348 = vmatprep.mubr.msk.f32.mxu1 %vm273_vm1, %v271_v16  ;;  %v580_v16 = vsub.s32 %v577_v9, %v2472_v1 }
  0xc8   : > { %v272_v17 = vpop.trf.xlu0 }
  0xc9   : > { %2349 = vmatmul.mubr.msk.f32.gmra.mxu1 %vm273_vm1, %v272_v17  ;;  %v591_v17 = vadd.s32 4294967256, %v2469_v62 }
 0x151   : > { %v2329_v18 = vpop.f32.mrf.mxu0 }
 0x152   : > { %506 = vmin.xlane.f32.xlu1 %v2329_v18 }
 0x153   : > { %v392_v19 = vpop.f32.mrf.mxu0 }
 0x154   : > { %504 = vmin.xlane.f32.xlu0 %v392_v19 }
 0x159   : > { %v2332_v20 = vpop.f32.mrf.mxu0 }
 0x15a   : > { %510 = vmin.xlane.f32.xlu1 %v2332_v20 }
 0x15b   : > { %v402_v21 = vpop.f32.mrf.mxu0 }
 0x15e   : > { %508 = vmin.xlane.f32.xlu1 %v402_v21 }
 0x161   : > { %v2335_v22 = vpop.f32.mrf.mxu0 }
 0x162   : > { %514 = vmin.xlane.f32.xlu1 %v2335_v22  ;;  %v472_v33 = vmin.f32 %v2329_v18, %v2335_v22  ;;  %v612_v22 = vadd.s32 4294967232, %v2469_v62 }
 0x163   : > { %v412_v23 = vpop.f32.mrf.mxu0 }
 0x164   : > { %v471_v32 = vmin.f32 %v392_v19, %v412_v23 }
 0x166   : > { %512 = vmin.xlane.f32.xlu1 %v412_v23 }
 0x169   : > { %v2338_v24 = vpop.f32.mrf.mxu0 }
 0x16a   : > { %518 = vmin.xlane.f32.xlu1 %v2338_v24  ;;  %v474_v34 = vmin.f32 %v2332_v20, %v2338_v24 }
 0x16b   : > { %v422_v25 = vpop.f32.mrf.mxu0 }
 0x16c   : > { %v473_v35 = vmin.f32 %v402_v21, %v422_v25  ;;  %v601_v21 = vsub.s32 %v598_v13, %v2472_v1 }
 0x16e   : > { %516 = vmin.xlane.f32.xlu1 %v422_v25  ;;  %v594_v25 = vsub.s32 %v591_v17, %v2472_v1 }
 0x171   : > { %v2341_v26 = vpop.f32.mrf.mxu1 }
 0x172   : > { %522 = vmin.xlane.f32.xlu1 %v2341_v26  ;;  %v476_v38 = vmin.f32 %v472_v33, %v2341_v26  ;;  %v605_v26 = vadd.s32 4294967240, %v2469_v62 }
 0x173   : > { %v432_v27 = vpop.f32.mrf.mxu1 }
 0x174   : > { %v475_v36 = vmin.f32 %v471_v32, %v432_v27 }
 0x176   : > { %520 = vmin.xlane.f32.xlu1 %v432_v27 }
 0x179   : > { %v2344_v28 = vpop.f32.mrf.mxu1 }
 0x17a   : > { %526 = vmin.xlane.f32.xlu1 %v2344_v28  ;;  %v478_v39 = vmin.f32 %v474_v34, %v2344_v28  ;;  %v608_v34 = vsub.s32 %v605_v26, %v2472_v1 }
 0x17b   : > { %v442_v29 = vpop.f32.mrf.mxu1 }
 0x17c   : > { %v477_v40 = vmin.f32 %v473_v35, %v442_v29  ;;  %v619_v35 = vadd.s32 4294967224, %v2469_v62 }
 0x17e   : > { %524 = vmin.xlane.f32.xlu1 %v442_v29 }
 0x181   : > { %v2347_v30 = vpop.f32.mrf.mxu1 }
 0x182   : > { %530 = vmin.xlane.f32.xlu1 %v2347_v30  ;;  %v480_v43 = vmin.f32 %v476_v38, %v2347_v30  ;;  %v615_v30 = vsub.s32 %v612_v22, %v2472_v1 }
 0x183   : > { %v452_v31 = vpop.f32.mrf.mxu1 }
 0x184   : > { %v479_v41 = vmin.f32 %v475_v36, %v452_v31 }
 0x186   : > { %528 = vmin.xlane.f32.xlu1 %v452_v31  ;;  %v483_v46 = vmin.f32 %v479_v41, %v480_v43  ;;  %v626_v31 = vadd.s32 4294967216, %v2469_v62  ;;  %v640_v41 = vadd.s32 4294967200, %v2469_v62  ;;  %v622_v43 = vsub.s32 %v619_v35, %v2472_v1 }
 0x189   : > { %v2350_v37 = vpop.f32.mrf.mxu1 }
 0x18a   : > { %v482_v44 = vmin.f32 %v478_v39, %v2350_v37  ;;  %v629_v39 = vsub.s32 %v626_v31, %v2472_v1 }
 0x18b   : > { %v462_v42 = vpop.f32.mrf.mxu1 }
 0x18c   : > { %v481_v45 = vmin.f32 %v477_v40, %v462_v42  ;;  %532 = vmin.xlane.f32.xlu1 %v462_v42 }
 0x18e   : > { %v484_v47 = vmin.f32 %v481_v45, %v482_v44  ;;  %v633_v44 = vadd.s32 4294967208, %v2469_v62 }
 0x190   : > { %v485_v48 = vmin.f32 %v483_v46, %v484_v47  ;;  %534 = vmin.xlane.f32.xlu1 %v2350_v37 }
 0x192   : > { %v486_v49 = vrot.slane %v485_v48, 4 }
 0x194   : > { %v487_v50 = vmin.f32 %v485_v48, %v486_v49  ;;  %v643_v48 = vsub.s32 %v640_v41, %v2472_v1  ;;  %v654_v49 = vadd.s32 4294967184, %v2469_v62 }
 0x196   : > { %v488_v51 = vrot.slane %v487_v50, 2 }
 0x198   : > { %v489_v52 = vmin.f32 %v487_v50, %v488_v51  ;;  %v636_v51 = vsub.s32 %v633_v44, %v2472_v1 }
 0x19a   : > { %v490_v53 = vrot.slane %v489_v52, 1 }
 0x19c   : > { %v491_v54 = vmin.f32 %v489_v52, %v490_v53  ;;  %v647_v52 = vadd.s32 4294967192, %v2469_v62 }
 0x19e   : > { %496 = vst [vmem:[%s235_s25] sm:$0x1] %v491_v54  ;;  %v650_v60 = vsub.s32 %v647_v52, %v2472_v1 }
 0x1db   : > { %v507_v55 = vpop.xlane.xlu1 %506 }
 0x1dc   : > { %v567_v15 = vrot.slane %v507_v55, %v566_v8  ;;  %v661_v55 = vadd.s32 4294967176, %v2469_v62 }
 0x1dd   : > { %v505_v4 = vpop.xlane.xlu0 %504 }
 0x1de   : > { %v562_v10 = vrot.slane %v505_v4, %v561_v3 }
 0x1e0   : > { %v569_v18 = vsel %vm568_vm2, %v567_v15, %v562_v10 }
 0x1e3   : > { %v511_v56 = vpop.xlane.xlu1 %510 }
 0x1e4   : > { %v581_v24 = vrot.slane %v511_v56, %v580_v16 }
 0x1e7   : > { %v509_v57 = vpop.xlane.xlu1 %508 }
 0x1e8   : > { %v574_v11 = vrot.slane %v509_v57, %v573_v5 }
 0x1ea   : > { %v576_v19 = vsel %vm575_vm3, %v574_v11, %v569_v18 }
 0x1eb   : > { %v515_v58 = vpop.xlane.xlu1 %514  ;;  %v583_v27 = vsel %vm582_vm4, %v581_v24, %v576_v19 }
 0x1ec   : > { %v595_v33 = vrot.slane %v515_v58, %v594_v25  ;;  %v657_v58 = vsub.s32 %v654_v49, %v2472_v1 }
 0x1ef   : > { %v513_v59 = vpop.xlane.xlu1 %512 }
 0x1f0   : > { %v588_v20 = vrot.slane %v513_v59, %v587_v12 }
 0x1f2   : > { %v590_v28 = vsel %vm589_vm5, %v588_v20, %v583_v27 }
 0x1f3   : > { %v519_v61 = vpop.xlane.xlu1 %518  ;;  %v597_v36 = vsel %vm596_vm6, %v595_v33, %v590_v28 }
 0x1f4   : > { %v609_v42 = vrot.slane %v519_v61, %v608_v34 }
 0x1f7   : > { %v517_v0 = vpop.xlane.xlu1 %516 }
 0x1f8   : > { %v602_v29 = vrot.slane %v517_v0, %v601_v21  ;;  %v664_v0 = vsub.s32 %v661_v55, %v2472_v1 }
 0x1fa   : > { %v604_v37 = vsel %vm603_vm7, %v602_v29, %v597_v36 }
 0x1fb   : > { %v523_v7 = vpop.xlane.xlu1 %522  ;;  %v611_v45 = vsel %vm610_vm8, %v609_v42, %v604_v37 }
 0x1fc   : > { %v623_v50 = vrot.slane %v523_v7, %v622_v43 }
 0x1ff   : > { %v521_v14 = vpop.xlane.xlu1 %520 }
 0x200   : > { %v616_v38 = vrot.slane %v521_v14, %v615_v30 }
 0x202   : > { %v618_v46 = vsel %vm617_vm9, %v616_v38, %v611_v45 }
 0x203   : > { %v527_v23 = vpop.xlane.xlu1 %526  ;;  %v625_v54 = vsel %vm624_vm10, %v623_v50, %v618_v46 }
 0x204   : > { %v637_v59 = vrot.slane %v527_v23, %v636_v51 }
 0x207   : > { %v525_v32 = vpop.xlane.xlu1 %524 }
 0x208   : > { %v630_v47 = vrot.slane %v525_v32, %v629_v39 }
 0x20a   : > { %v632_v56 = vsel %vm631_vm11, %v630_v47, %v625_v54 }
 0x20b   : > { %v531_v40 = vpop.xlane.xlu1 %530  ;;  %v639_v63 = vsel %vm638_vm12, %v637_v59, %v632_v56 }
 0x20c   : > { %v651_v4 = vrot.slane %v531_v40, %v650_v60 }
 0x20f   : > { %v529_v53 = vpop.xlane.xlu1 %528 }
 0x210   : > { %v644_v57 = vrot.slane %v529_v53, %v643_v48 }
 0x212   : > { %v646_v2 = vsel %vm645_vm13, %v644_v57, %v639_v63 }
 0x213   : > { %v653_v5 = vsel %vm652_vm14, %v651_v4, %v646_v2 }
 0x215   : > { %v533_v61 = vpop.xlane.xlu1 %532 }
 0x216   : > { %v658_v3 = vrot.slane %v533_v61, %v657_v58 }
 0x218   : > { %v660_v7 = vsel %vm659_vm15, %v658_v3, %v653_v5 }
 0x219   : > { %v535_v62 = vpop.xlane.xlu1 %534 }
 0x21a   : > { %v665_v6 = vrot.slane %v535_v62, %v664_v0 }
 0x21c   : > { %v667_v8 = vsel %vm666_vm0, %v665_v6, %v660_v7 }
 0x21d   : > { %672 = vst [vmem:[%s238_s28] sm:$0x1] %v667_v8 }
 0x21e PF: > { %s14_s14 = sadd.s32 1, %s2400_s14   ;;  %s2522_s12 = smov %s2396_s13 }
 0x21f   : > { %p11_p5 = scmp.ge.s32.totalorder %s14_s14, 6   ;;  %s2523_s13 = smov %s2525_s15 }
 0x221   :  { %13 = sbr.rel (!%p11_p5) target bundleno = 2 (0x2), region = 91 }

</bundles_post_ra>
